<compile_context>
chip_gen: v7x
topology: tpu7x:2x2x1
jax: 0.10.0
libtpu: 0.0.40
codegen_flags: <defaults>
</compile_context>

<pallas_src>
import math

import numpy as np
import jax
import jax.numpy as jnp
from jax.experimental import pallas as pl
from jax.experimental.pallas import tpu as pltpu


def _timestep_embedder_kernel(args_ref, w1c_ref, w1s_ref, b1_ref, w2_ref,
                              b2_ref, out_ref):
    # args_ref  : (tb, half)          f32  (sigma * freqs, precomputed in wrapper)
    # w1c/w1s   : (half, n_hidden)    bf16 (rows [:half] / [half:] of Linear1 weight)
    # b1 / b2   : (1, n_hidden)       f32
    # w2        : (n_hidden, n_hidden) bf16
    args = args_ref[...]                                # (tb, half) f32
    cos_e = jnp.cos(args).astype(w1c_ref.dtype)         # bf16 MXU operands
    sin_e = jnp.sin(args).astype(w1s_ref.dtype)

    # Linear1 == [cos | sin] @ w1 + b1, done as two half-K matmuls (f32 accum),
    # so no (tb, freq_embd) concat buffer is materialized.
    h = (jnp.dot(cos_e, w1c_ref[...], preferred_element_type=jnp.float32)
         + jnp.dot(sin_e, w1s_ref[...], preferred_element_type=jnp.float32)
         + b1_ref[...])

    # SiLU in f32 via the single-EUP-op tanh form: sigmoid(x) = 0.5*tanh(x/2)+0.5.
    h = h * (0.5 * jnp.tanh(0.5 * h) + 0.5)

    # Linear2 (bf16 operands, f32 accumulation).
    o = (jnp.dot(h.astype(w2_ref.dtype), w2_ref[...],
                 preferred_element_type=jnp.float32)
         + b2_ref[...])
    out_ref[...] = o.astype(out_ref.dtype)


def timestep_embedder(sigma_t, w1, b1, w2, b2, *, freq_embd: int,
                      max_period: float = 10000.0, batch_tile: int = 256,
                      out_dtype=jnp.float32):
    """sigma_t: (B,); w1: (freq_embd, n_hidden); w2: (n_hidden, n_hidden).
    Weights stored (in_features, out_features) so the kernel does x @ W + b.
    Returns (B, n_hidden) in `out_dtype` (float32 by default)."""
    assert freq_embd % 2 == 0, "odd freq_embd (zero-pad branch) not implemented"
    B = sigma_t.shape[0]
    half = freq_embd // 2
    n_hidden = w2.shape[1]

    # Static frequency table (trace-time numpy) folded directly into the input
    # slab: args[b, j] = sigma[b] * freqs[j].  The multiply fuses into the XLA
    # broadcast we already pay for; the kernel starts at cos/sin.
    freqs = np.exp((-math.log(max_period) / half)
                   * np.arange(half, dtype=np.float32))
    args_slab = sigma_t.astype(jnp.float32)[:, None] * jnp.asarray(freqs)[None, :]

    # MXU operands in bf16 (halves weight DMA, single-pass MXU); biases f32.
    w1c = w1[:half].astype(jnp.bfloat16)            # (half, n_hidden)
    w1s = w1[half:].astype(jnp.bfloat16)            # (half, n_hidden)
    w2b = w2.astype(jnp.bfloat16)                   # (n_hidden, n_hidden)
    b1_row = b1.astype(jnp.float32).reshape(1, n_hidden)
    b2_row = b2.astype(jnp.float32).reshape(1, n_hidden)

    small_b_no_grid = 64
    if B <= small_b_no_grid:
        # Small batch: single invocation, no grid, everything single-buffered
        # in VMEM (no pipeline per-step overhead).
        vmem = pltpu.MemorySpace.VMEM
        return pl.pallas_call(
            _timestep_embedder_kernel,
            out_shape=jax.ShapeDtypeStruct((B, n_hidden), out_dtype),
            in_specs=[pl.BlockSpec(memory_space=vmem)] * 6,
            out_specs=pl.BlockSpec(memory_space=vmem),
        )(args_slab, w1c, w1s, b1_row, w2b, b2_row)

    # Grid path: tile over batch with the batch axis "parallel" (uses both
    # TensorCores on v7x).  Mid-size batches get an explicit 2-tile split so
    # the two v7x cores are balanced; large batches use batch_tile.
    if B <= batch_tile:
        tb = ((pl.cdiv(B, 2) + 7) // 8) * 8          # 2-tile split, 8-aligned
    else:
        tb = batch_tile
    assert tb % 8 == 0, "batch tile must be a multiple of 8 (f32 sublane tiling)"
    Bp = pl.cdiv(B, tb) * tb
    if Bp != B:
        args_slab = jnp.pad(args_slab, ((0, Bp - B), (0, 0)))

    # Explicit VMEM budget: resident weights/biases (x2 covers the
    # double-buffered fallback) + double-buffered input/output tiles, with
    # headroom; clamped to 64 MiB so it stays valid on v7x.
    resident = sum(int(a.size) * a.dtype.itemsize
                   for a in (w1c, w1s, w2b, b1_row, b2_row))
    per_step = tb * half * 4 + tb * n_hidden * jnp.dtype(out_dtype).itemsize
    vmem_limit = int(1.5 * (2 * resident + 2 * per_step)) + (2 << 20)
    vmem_limit = min(max(vmem_limit, 16 << 20), 64 << 20)

    def _grid_call(single_buffer_weights: bool):
        # Constant-index-map blocks never change across the grid; request
        # single buffering to halve their VMEM footprint.
        const_kw = ({"pipeline_mode": pl.Buffered(1)}
                    if single_buffer_weights else {})
        grid_spec = pltpu.PrefetchScalarGridSpec(
            num_scalar_prefetch=0,
            grid=(Bp // tb,),
            in_specs=[
                pl.BlockSpec((tb, half), lambda i: (i, 0)),                        # args tile
                pl.BlockSpec((half, n_hidden), lambda i: (0, 0), **const_kw),      # w1[:half]
                pl.BlockSpec((half, n_hidden), lambda i: (0, 0), **const_kw),      # w1[half:]
                pl.BlockSpec((1, n_hidden), lambda i: (0, 0), **const_kw),         # b1
                pl.BlockSpec((n_hidden, n_hidden), lambda i: (0, 0), **const_kw),  # w2
                pl.BlockSpec((1, n_hidden), lambda i: (0, 0), **const_kw),         # b2
            ],
            out_specs=pl.BlockSpec((tb, n_hidden), lambda i: (i, 0)),
        )
        return pl.pallas_call(
            _timestep_embedder_kernel,
            out_shape=jax.ShapeDtypeStruct((Bp, n_hidden), out_dtype),
            grid_spec=grid_spec,
            compiler_params=pltpu.CompilerParams(
                dimension_semantics=("parallel",),
                vmem_limit_bytes=vmem_limit),
        )(args_slab, w1c, w1s, b1_row, w2b, b2_row)

    try:
        out = _grid_call(single_buffer_weights=True)
    except Exception:
        # TODO(synk): pl.Buffered(1) single-buffering rejected by this jax
        # version; fall back to default double-buffered constant blocks.
        out = _grid_call(single_buffer_weights=False)
    return out[:B]


def reference_jax(sigma_t, w1, b1, w2, b2, *, freq_embd, max_period=10000.0):
    half = freq_embd // 2
    freqs = jnp.exp(-math.log(max_period)
                    * jnp.arange(half, dtype=jnp.float32) / half)
    args = sigma_t.astype(jnp.float32)[:, None] * freqs[None, :]
    emb = jnp.concatenate([jnp.cos(args), jnp.sin(args)], axis=-1)
    h = emb @ w1 + b1
    h = h * jax.nn.sigmoid(h)
    return h @ w2 + b2


if __name__ == "__main__":
    FREQ_EMBD = 256      # even, lane-aligned (module default is 512)
    N_HIDDEN = 128

    key = jax.random.PRNGKey(0)
    k_s, k_w1, k_b1, k_w2, k_b2, k_s2 = jax.random.split(key, 6)

    # Deterministic "Linear" parameters, stored (in, out) for x @ W + b.
    w1 = jax.random.normal(k_w1, (FREQ_EMBD, N_HIDDEN), jnp.float32) / math.sqrt(FREQ_EMBD)
    b1 = jax.random.normal(k_b1, (N_HIDDEN,), jnp.float32) * 0.01
    w2 = jax.random.normal(k_w2, (N_HIDDEN, N_HIDDEN), jnp.float32) / math.sqrt(N_HIDDEN)
    b2 = jax.random.normal(k_b2, (N_HIDDEN,), jnp.float32) * 0.01

    # --- small batch: no-grid, fully VMEM-resident path ---
    B = 8
    sigma_t = jax.random.uniform(k_s, (B,), jnp.float32) * 10.0
    out = jax.block_until_ready(
        timestep_embedder(sigma_t, w1, b1, w2, b2, freq_embd=FREQ_EMBD))
    ref = reference_jax(sigma_t, w1, b1, w2, b2, freq_embd=FREQ_EMBD)
    assert out.shape == (B, N_HIDDEN)
    # bf16 MXU operands with f32 accumulation -> loosened tolerance vs f32 ref.
    assert jnp.allclose(out, ref, atol=5e-2, rtol=5e-2), "small-batch mismatch"

    # --- larger batch (not a tile multiple): 2-tile "parallel" grid path ---
    B2 = 150
    sigma_t2 = jax.random.uniform(k_s2, (B2,), jnp.float32) * 10.0
    out2 = jax.block_until_ready(
        timestep_embedder(sigma_t2, w1, b1, w2, b2, freq_embd=FREQ_EMBD))
    ref2 = reference_jax(sigma_t2, w1, b1, w2, b2, freq_embd=FREQ_EMBD)
    assert out2.shape == (B2, N_HIDDEN)
    assert jnp.allclose(out2, ref2, atol=5e-2, rtol=5e-2), "batched mismatch"

    # --- bf16 output path (halves output writeback HBM bytes) ---
    out3 = jax.block_until_ready(
        timestep_embedder(sigma_t2, w1, b1, w2, b2, freq_embd=FREQ_EMBD,
                          out_dtype=jnp.bfloat16))
    assert out3.shape == (B2, N_HIDDEN) and out3.dtype == jnp.bfloat16
    assert jnp.allclose(out3.astype(jnp.float32), ref2,
                        atol=1e-1, rtol=1e-1), "bf16-output mismatch"

    print("KERNEL_OK")
</pallas_src>

<mosaic_0001>
module attributes {stable_mosaic.version = 11 : i64} {
  func.func @_timestep_embedder_kernel(%arg0: memref<8x128xf32, #tpu.memory_space<vmem>>, %arg1: memref<128x128xbf16, #tpu.memory_space<vmem>>, %arg2: memref<128x128xbf16, #tpu.memory_space<vmem>>, %arg3: memref<1x128xf32, #tpu.memory_space<vmem>>, %arg4: memref<128x128xbf16, #tpu.memory_space<vmem>>, %arg5: memref<1x128xf32, #tpu.memory_space<vmem>>, %arg6: memref<8x128xf32, #tpu.memory_space<vmem>>) attributes {dimension_semantics = [], scalar_prefetch = 0 : i64, scratch_operands = 0 : i64, tpu.core_type = #tpu.core_type<tc>} {
    %c0 = arith.constant 0 : index
    %c0_0 = arith.constant 0 : index
    %0 = vector.load %arg0[%c0, %c0_0] : memref<8x128xf32, #tpu.memory_space<vmem>>, vector<8x128xf32>
    %1 = math.cos %0 : vector<8x128xf32>
    %2 = arith.truncf %1 : vector<8x128xf32> to vector<8x128xbf16>
    %3 = math.sin %0 : vector<8x128xf32>
    %4 = arith.truncf %3 : vector<8x128xf32> to vector<8x128xbf16>
    %c0_1 = arith.constant 0 : index
    %c0_2 = arith.constant 0 : index
    %5 = vector.load %arg1[%c0_1, %c0_2] : memref<128x128xbf16, #tpu.memory_space<vmem>>, vector<128x128xbf16>
    %cst = arith.constant dense<0.000000e+00> : vector<8x128xf32>
    %6 = tpu.matmul %2, %5, %cst {dimension_numbers = #tpu.dot_dimension_numbers<[1], [0], [0], [1], [0, 0, 1, 1], [], []>} : vector<8x128xbf16>, vector<128x128xbf16>, vector<8x128xf32> -> vector<8x128xf32>
    %c0_3 = arith.constant 0 : index
    %c0_4 = arith.constant 0 : index
    %7 = vector.load %arg2[%c0_3, %c0_4] : memref<128x128xbf16, #tpu.memory_space<vmem>>, vector<128x128xbf16>
    %cst_5 = arith.constant dense<0.000000e+00> : vector<8x128xf32>
    %8 = tpu.matmul %4, %7, %cst_5 {dimension_numbers = #tpu.dot_dimension_numbers<[1], [0], [0], [1], [0, 0, 1, 1], [], []>} : vector<8x128xbf16>, vector<128x128xbf16>, vector<8x128xf32> -> vector<8x128xf32>
    %9 = arith.addf %6, %8 : vector<8x128xf32>
    %c0_6 = arith.constant 0 : index
    %c0_7 = arith.constant 0 : index
    %10 = vector.load %arg3[%c0_6, %c0_7] : memref<1x128xf32, #tpu.memory_space<vmem>>, vector<1x128xf32>
    %11 = vector.broadcast %10 : vector<1x128xf32> to vector<8x128xf32>
    %12 = arith.addf %9, %11 : vector<8x128xf32>
    %cst_8 = arith.constant 5.000000e-01 : f32
    %13 = vector.broadcast %cst_8 : f32 to vector<8x128xf32>
    %14 = arith.mulf %13, %12 : vector<8x128xf32>
    %15 = math.tanh %14 : vector<8x128xf32>
    %cst_9 = arith.constant 5.000000e-01 : f32
    %16 = vector.broadcast %cst_9 : f32 to vector<8x128xf32>
    %17 = arith.mulf %16, %15 : vector<8x128xf32>
    %cst_10 = arith.constant 5.000000e-01 : f32
    %18 = vector.broadcast %cst_10 : f32 to vector<8x128xf32>
    %19 = arith.addf %17, %18 : vector<8x128xf32>
    %20 = arith.mulf %12, %19 : vector<8x128xf32>
    %21 = arith.truncf %20 : vector<8x128xf32> to vector<8x128xbf16>
    %c0_11 = arith.constant 0 : index
    %c0_12 = arith.constant 0 : index
    %22 = vector.load %arg4[%c0_11, %c0_12] : memref<128x128xbf16, #tpu.memory_space<vmem>>, vector<128x128xbf16>
    %cst_13 = arith.constant dense<0.000000e+00> : vector<8x128xf32>
    %23 = tpu.matmul %21, %22, %cst_13 {dimension_numbers = #tpu.dot_dimension_numbers<[1], [0], [0], [1], [0, 0, 1, 1], [], []>} : vector<8x128xbf16>, vector<128x128xbf16>, vector<8x128xf32> -> vector<8x128xf32>
    %c0_14 = arith.constant 0 : index
    %c0_15 = arith.constant 0 : index
    %24 = vector.load %arg5[%c0_14, %c0_15] : memref<1x128xf32, #tpu.memory_space<vmem>>, vector<1x128xf32>
    %25 = vector.broadcast %24 : vector<1x128xf32> to vector<8x128xf32>
    %26 = arith.addf %23, %25 : vector<8x128xf32>
    %c0_16 = arith.constant 0 : index
    %c0_17 = arith.constant 0 : index
    %27 = vector.load %arg6[%c0_16, %c0_17] : memref<8x128xf32, #tpu.memory_space<vmem>>, vector<8x128xf32>
    tpu.vector_store %arg6[%c0_16, %c0_17], %26 {strides = array<i32>} : memref<8x128xf32, #tpu.memory_space<vmem>>, vector<8x128xf32>,
    return
  }
}

</mosaic_0001>

<bundles_post_ra>
// kernel: tpu_custom_call.1
= control target key start
LH: loop header
LB: loop body
LE: loop exit
PB: predicated region body
PF: predicated region fallthrough
CT: control target
= control target key end

     0   :  { %11 = vsyncpa [#allocation3], 0  ;;  %s1103_s0 = inlined_call_operand.hbm [shape: f32[8,128], index: 0, kind: input, shape index: {}]   ;;  %s1104_s1 = inlined_call_operand.hbm [shape: bf16[128,128], index: 1, kind: input, shape index: {}]   ;;  %s1105_s2 = inlined_call_operand.hbm [shape: bf16[128,128], index: 2, kind: input, shape index: {}]   ;;  %s1106_s3 = inlined_call_operand.vmem [shape: f32[1,128], index: 3, kind: input, shape index: {}]   ;;  %s1107_s4 = inlined_call_operand.hbm [shape: bf16[128,128], index: 4, kind: input, shape index: {}]   ;;  %s1108_s5 = inlined_call_operand.vmem [shape: f32[1,128], index: 5, kind: input, shape index: {}]   ;;  %s1109_s6 = inlined_call_operand.hbm [shape: f32[8,128], index: 6, kind: output, shape index: {}]  }
   0x1   :  { %12 = vsyncpa [#allocation6], 0 }
   0x2   :  { %13 = vsyncpa [#allocation9], 0 }
   0x3   :  { %14 = vsyncpa [#allocation4], 0  ;;  %s927_s21 = smov [#allocation5]   ;;  %s809_s25 = scalar_lea.hbm %s1104_s1, 1024 }
   0x4   :  { %s30_s22 = sshll.u32 %s927_s21, 4  ;;  %p810_p0 = scmp.ne.s32.totalorder %s1104_s1, %s809_s25  ;;  %s31_s22 = int_to_ptr.vmem [resolvable:$true] %s30_s22 }
   0x5   :  { %p813_p1 = scmp.lt.u32.totalorder %s809_s25, %s1104_s1 }
   0x7   :  { %p815_p2 = pnand %p813_p1, %p810_p0 }
   0x9   :  { %818 = shalt.err (!%p815_p2)
}
   0xa   :  { %s819_s30 = scalar_lea.vmem %s31_s22, 1024  ;;  %p824_p4 = scmp.lt.s32.totalorder %s31_s22, %s31_s22 }
   0xb   :  { %p820_p3 = scmp.ne.s32.totalorder %s31_s22, %s819_s30  ;;  %p825_p5 = scmp.lt.s32.totalorder %s819_s30, %s819_s30 }
   0xd   :  { %p826_p6 = por %p825_p5, %p824_p4 }
   0xf   :  { %p827_p7 = pnand %p826_p6, %p820_p3 }
  0x11   :  { %830 = shalt.err (!%p827_p7)
}
  0x12   :  { %s928_s7 = smov 64   ;;  %s929_s8 = smov 4  }
  0x13   :  { %36 = dma.hbm_to_vmem [thread:$0]  %s1104_s1, 1024, %s31_s22, [#allocation6], %s928_s7, %s928_s7, %s929_s8  }
  0x14   :  { %s930_s11 = smov [#allocation2]   ;;  %s931_s13 = smov [#allocation7]  }
  0x15   :  { %s21_s12 = sshll.u32 %s930_s11, 4  ;;  %s42_s14 = sshll.u32 %s931_s13, 4  ;;  %s22_s12 = int_to_ptr.vmem [resolvable:$true] %s21_s12  ;;  %s43_s14 = int_to_ptr.vmem [resolvable:$true] %s42_s14 }
  0x16   :  { %s831_s17 = scalar_lea.hbm %s1103_s0, 128 }
  0x17   :  { %p832_p8 = scmp.ne.s32.totalorder %s1103_s0, %s831_s17  ;;  %p835_p9 = scmp.lt.u32.totalorder %s831_s17, %s1103_s0 }
  0x19   :  { %p837_p10 = pnand %p835_p9, %p832_p8 }
  0x1b   :  { %840 = shalt.err (!%p837_p10)
}
  0x1c   :  { %s841_s1 = scalar_lea.vmem %s22_s12, 128  ;;  %p846_p12 = scmp.lt.s32.totalorder %s22_s12, %s22_s12 }
  0x1d   :  { %p842_p11 = scmp.ne.s32.totalorder %s22_s12, %s841_s1  ;;  %p847_p13 = scmp.lt.s32.totalorder %s841_s1, %s841_s1 }
  0x1f   :  { %p848_p0 = por %p847_p13, %p846_p12 }
  0x21   :  { %p849_p1 = pnand %p848_p0, %p842_p11 }
  0x23   :  { %852 = shalt.err (!%p849_p1)
}
  0x24   :  { %24 = dma.hbm_to_vmem [thread:$0]  %s1103_s0, 128, %s22_s12, [#allocation3]  }
  0x25   :  { %s853_s26 = scalar_lea.hbm %s1105_s2, 1024 }
  0x26   :  { %p854_p2 = scmp.ne.s32.totalorder %s1105_s2, %s853_s26  ;;  %p857_p3 = scmp.lt.u32.totalorder %s853_s26, %s1105_s2 }
  0x28   :  { %p859_p4 = pnand %p857_p3, %p854_p2 }
  0x2a   :  { %862 = shalt.err (!%p859_p4)
}
  0x2b   :  { %s863_s9 = scalar_lea.vmem %s43_s14, 1024  ;;  %p868_p6 = scmp.lt.s32.totalorder %s43_s14, %s43_s14 }
  0x2c   :  { %p864_p5 = scmp.ne.s32.totalorder %s43_s14, %s863_s9  ;;  %p869_p7 = scmp.lt.s32.totalorder %s863_s9, %s863_s9 }
  0x2e   :  { %p870_p8 = por %p869_p7, %p868_p6 }
  0x30   :  { %p871_p9 = pnand %p870_p8, %p864_p5 }
  0x32   :  { %874 = shalt.err (!%p871_p9)
}
  0x33   :  { %48 = dma.hbm_to_vmem [thread:$0]  %s1105_s2, 1024, %s43_s14, [#allocation6], %s928_s7, %s928_s7, %s929_s8  }
  0x34   :  { %s932_s11 = smov [#allocation8]   ;;  %s875_s16 = scalar_lea.hbm %s1107_s4, 1024 }
  0x35   :  { %s56_s12 = sshll.u32 %s932_s11, 4  ;;  %p876_p10 = scmp.ne.s32.totalorder %s1107_s4, %s875_s16  ;;  %s57_s12 = int_to_ptr.vmem [resolvable:$true] %s56_s12 }
  0x36   :  { %p879_p11 = scmp.lt.u32.totalorder %s875_s16, %s1107_s4 }
  0x38   :  { %p881_p12 = pnand %p879_p11, %p876_p10 }
  0x3a   :  { %884 = shalt.err (!%p881_p12)
}
  0x3b   :  { %s885_s21 = scalar_lea.vmem %s57_s12, 1024  ;;  %p890_p0 = scmp.lt.s32.totalorder %s57_s12, %s57_s12 }
  0x3c   :  { %p886_p13 = scmp.ne.s32.totalorder %s57_s12, %s885_s21  ;;  %p891_p1 = scmp.lt.s32.totalorder %s885_s21, %s885_s21 }
  0x3e   :  { %p892_p2 = por %p891_p1, %p890_p0 }
  0x40   :  { %p893_p3 = pnand %p892_p2, %p886_p13 }
  0x42   :  { %896 = shalt.err (!%p893_p3)
}
  0x43   :  { %62 = dma.hbm_to_vmem [thread:$0]  %s1107_s4, 1024, %s57_s12, [#allocation9], %s928_s7, %s928_s7, %s929_s8  }
  0x44   :  { %919 = dma.done.wait [#allocation3], 128  }
  0x45   :  { %920 = vsyncadd [#allocation3], 4294967168 }
  0x46   :  { %921 = dma.done.wait [#allocation6], 2048  }
  0x47   :  { %922 = vsyncadd [#allocation6], 4294965248 }
  0x48   :  { %923 = dma.done.wait [#allocation9], 1024  }
  0x49   :  { %924 = vsyncadd [#allocation9], 4294966272  ;;  %v933_v0 = vmov 0.0   ;;  %vm934_vm0 = vmmov 0   ;;  %v779_v1 = vld [vmem:[#allocation7] sm:$0xff]   ;;  %v781_v3 = vld [vmem:[#allocation7 + $0x8] sm:$0xff]  }
  0x4a   :  { %700 = vmatprep.subr.bf16.mxu0 %v933_v0  ;;  %720 = vmatprep.subr.bf16.mxu1 %v933_v0  ;;  %v780_v2 = vld [vmem:[#allocation5] sm:$0xff]   ;;  %v782_v4 = vld [vmem:[#allocation5 + $0x8] sm:$0xff]   ;;  %v783_v5 = vld [vmem:[#allocation7 + $0x10] sm:$0xff]   ;;  %v935_v29 = vmov 683565275  }
  0x4b   :  { %716 = vmatprep.mubr.msk.bf16.mxu0 %vm934_vm0, %v933_v0  ;;  %736 = vmatprep.mubr.msk.bf16.mxu1 %vm934_vm0, %v933_v0  ;;  %v784_v6 = vld [vmem:[#allocation5 + $0x10] sm:$0xff]   ;;  %v785_v7 = vld [vmem:[#allocation7 + $0x18] sm:$0xff]   ;;  %v787_v9 = vld [vmem:[#allocation7 + $0x20] sm:$0xff]   ;;  %v936_v31 = vmov 2475754826  }
  0x4c   :  { %701 = vmatpush3.bf16.msra.mxu0 %v779_v1  ;;  %721 = vmatpush3.bf16.msra.mxu1 %v780_v2  ;;  %v786_v8 = vld [vmem:[#allocation5 + $0x18] sm:$0xff]   ;;  %v788_v10 = vld [vmem:[#allocation5 + $0x20] sm:$0xff]   ;;  %v789_v12 = vld [vmem:[#allocation7 + $0x28] sm:$0xff]   ;;  %v937_v33 = vmov 2131351028  }
  0x4d   :  { %702 = vmatprep.subr.bf16.mxu0 %v933_v0  ;;  %722 = vmatprep.subr.bf16.mxu1 %v933_v0  ;;  %v1048_v11 = vld [vmem:[#allocation2] sm:$0xff]  ;;  %v790_v14 = vld [vmem:[#allocation5 + $0x28] sm:$0xff]   ;;  %v791_v17 = vld [vmem:[#allocation7 + $0x30] sm:$0xff]   ;;  %v938_v35 = vmov 2102212464  }
  0x4e   :  { %v82_v13 = vand.u32 2139095040, %v1048_v11  ;;  %v79_v15 = vand.u32 2147483647, %v1048_v11  ;;  %v792_v19 = vld [vmem:[#allocation5 + $0x30] sm:$0xff]   ;;  %v793_v22 = vld [vmem:[#allocation7 + $0x38] sm:$0xff]   ;;  %vm81_vm8 = vcmp.lt.s32.totalorder %v1048_v11, 0 }
  0x4f   :  { %v794_v24 = vld [vmem:[#allocation5 + $0x38] sm:$0xff]   ;;  %v939_v37 = vmov 920167782   ;;  %v940_v44 = vmov 1326507024  }
  0x50   :  { %703 = vmatpush3.bf16.msra.mxu0 %v781_v3  ;;  %723 = vmatpush3.bf16.msra.mxu1 %v782_v4  ;;  %v83_v16 = vshrl.u32 %v82_v13, 23  ;;  %v86_v21 = vand.u32 8388607, %v79_v15  ;;  %vm80_vm9 = vcmp.le.f32.partialorder %v79_v15, 0.7853982 }
  0x51   :  { %704 = vmatprep.subr.bf16.mxu0 %v933_v0  ;;  %724 = vmatprep.subr.bf16.mxu1 %v933_v0 }
  0x52   :  { %v639_v18 = vadd.s32 4294967169, %v83_v16  ;;  %v87_v26 = vor.u32 8388608, %v86_v21 }
  0x54   :  { %705 = vmatpush3.bf16.msra.mxu0 %v783_v5  ;;  %725 = vmatpush3.bf16.msra.mxu1 %v784_v6  ;;  %v89_v20 = vadd.s32 1, %v639_v18  ;;  %v127_v46 = vshll.u32 %v87_v26, 8 }
  0x55   :  { %706 = vmatprep.subr.bf16.mxu0 %v933_v0  ;;  %726 = vmatprep.subr.bf16.mxu1 %v933_v0 }
  0x56   :  { %vm90_vm1 = vcmp.gt.s32.totalorder %v89_v20, 0 }
  0x57   :  { %v91_v23 = vsel %vm90_vm1, %v89_v20, 0  ;;  %vm171_vm1 = vweird.f32 %v1048_v11 }
  0x58   :  { %707 = vmatpush3.bf16.msra.mxu0 %v785_v7  ;;  %727 = vmatpush3.bf16.msra.mxu1 %v786_v8  ;;  %v93_v25 = vand.u32 31, %v91_v23  ;;  %v92_v27 = vshrl.u32 %v91_v23, 5 }
  0x59   :  { %708 = vmatprep.subr.bf16.mxu0 %v933_v0  ;;  %728 = vmatprep.subr.bf16.mxu1 %v933_v0 }
  0x5a   :  { %v94_v28 = vsub.s32 32, %v93_v25  ;;  %v96_v30 = vshll.u32 %v935_v29, %v93_v25  ;;  %v99_v32 = vshll.u32 %v936_v31, %v93_v25  ;;  %v102_v34 = vshll.u32 %v937_v33, %v93_v25 }
  0x5b   :  { %v105_v36 = vshll.u32 %v938_v35, %v93_v25  ;;  %v108_v38 = vshll.u32 %v939_v37, %v93_v25  ;;  %vm111_vm2 = vcmp.lt.s32.totalorder %v92_v27, 1  ;;  %vm114_vm3 = vcmp.lt.s32.totalorder %v92_v27, 4 }
  0x5c   :  { %709 = vmatpush3.bf16.msra.mxu0 %v787_v9  ;;  %729 = vmatpush3.bf16.msra.mxu1 %v788_v10  ;;  %v95_v39 = vshrl.u32 %v935_v29, %v94_v28  ;;  %v97_v40 = vshrl.u32 %v936_v31, %v94_v28  ;;  %v100_v41 = vshrl.u32 %v937_v33, %v94_v28  ;;  %vm112_vm4 = vcmp.lt.s32.totalorder %v92_v27, 2 }
  0x5d   :  { %710 = vmatprep.subr.bf16.mxu0 %v933_v0  ;;  %730 = vmatprep.subr.bf16.mxu1 %v933_v0  ;;  %v103_v42 = vshrl.u32 %v938_v35, %v94_v28  ;;  %v106_v43 = vshrl.u32 %v939_v37, %v94_v28  ;;  %v109_v45 = vshrl.u32 %v940_v44, %v94_v28  ;;  %vm113_vm5 = vcmp.lt.s32.totalorder %v92_v27, 3 }
  0x5e   :  { %v98_v47 = vor.u32 %v97_v40, %v96_v30  ;;  %v101_v48 = vor.u32 %v100_v41, %v99_v32 }
  0x5f   :  { %v104_v49 = vor.u32 %v103_v42, %v102_v34  ;;  %v107_v50 = vor.u32 %v106_v43, %v105_v36  ;;  %v110_v51 = vor.u32 %v109_v45, %v108_v38 }
  0x60   :  { %711 = vmatpush3.bf16.msra.mxu0 %v789_v12  ;;  %731 = vmatpush3.bf16.msra.mxu1 %v790_v14  ;;  %v115_v52 = vsel %vm111_vm2, %v95_v39, %v98_v47  ;;  %v119_v54 = vsel %vm111_vm2, %v98_v47, %v101_v48 }
  0x61   :  { %712 = vmatprep.subr.bf16.mxu0 %v933_v0  ;;  %732 = vmatprep.subr.bf16.mxu1 %v933_v0  ;;  %v116_v53 = vsel %vm114_vm3, %v104_v49, 2102212464  ;;  %v123_v55 = vsel %vm111_vm2, %v101_v48, %v104_v49  ;;  %v120_v57 = vsel %vm114_vm3, %v107_v50, 920167782  ;;  %v124_v58 = vsel %vm114_vm3, %v110_v51, 1326507024 }
  0x62   :  { %v117_v56 = vsel %vm113_vm5, %v101_v48, %v116_v53  ;;  %v121_v59 = vsel %vm113_vm5, %v104_v49, %v120_v57  ;;  %v125_v60 = vsel %vm113_vm5, %v107_v50, %v124_v58  ;;  %v799_v57 = vld [vmem:[#allocation8 + $0x20] sm:$0xff]   ;;  %v800_v58 = vld [vmem:[#allocation8 + $0x28] sm:$0xff]  }
  0x63   :  { %v118_v61 = vsel %vm112_vm4, %v115_v52, %v117_v56  ;;  %v122_v62 = vsel %vm112_vm4, %v119_v54, %v121_v59  ;;  %v126_v63 = vsel %vm112_vm4, %v123_v55, %v125_v60  ;;  %v795_v52 = vld [vmem:[#allocation8] sm:$0xff]   ;;  %v796_v55 = vld [vmem:[#allocation8 + $0x8] sm:$0xff]   ;;  %v798_v56 = vld [vmem:[#allocation8 + $0x18] sm:$0xff]  }
  0x64   :  { %713 = vmatpush3.bf16.msra.mxu0 %v791_v17  ;;  %733 = vmatpush3.bf16.msra.mxu1 %v792_v19  ;;  %v1061_v1 = vmul.u32.u64.low %v127_v46, %v126_v63  ;;  %v1062_v2 = vmul.u32.u64.high %v127_v46, %v126_v63, %v1061_v1  ;;  %v1064_v3 = vmul.u32.u64.low %v127_v46, %v122_v62  ;;  %v1065_v4 = vmul.u32.u64.high %v127_v46, %v122_v62, %v1064_v3  ;;  %v801_v59 = vld [vmem:[#allocation8 + $0x30] sm:$0xff]   ;;  %v802_v60 = vld [vmem:[#allocation8 + $0x38] sm:$0xff]  }
  0x65   :  { %714 = vmatprep.subr.bf16.mxu0 %v933_v0  ;;  %734 = vmatprep.subr.bf16.mxu1 %v933_v0  ;;  %v134_v5 = vmul.u32 %v127_v46, %v118_v61  ;;  %v663_v63 = vld [vmem:[%s1106_s3] ss:$0 sm:$0xff]  ;;  %s941_s3 = smov [#allocation10]  }
  0x66   :  { %vm136_vm6 = vc.u32 %v1062_v2, %v1064_v3  ;;  %v137_v6 = vadd.s32 1, %v1065_v4  ;;  %v135_v19 = vadd.s32 %v1064_v3, %v1062_v2  ;;  %s628_s22 = sshll.u32 %s941_s3, 4  ;;  %s629_s22 = int_to_ptr.vmem [resolvable:$true] %s628_s22 }
  0x67   :  { %s897_s23 = scalar_lea.vmem %s629_s22, 128  ;;  %p902_p5 = scmp.lt.s32.totalorder %s629_s22, %s629_s22 }
  0x68   :  { %715 = vmatpush3.bf16.msra.mxu0 %v793_v22  ;;  %735 = vmatpush3.bf16.msra.mxu1 %v794_v24  ;;  %v138_v7 = vsel %vm136_vm6, %v137_v6, %v1065_v4  ;;  %p898_p4 = scmp.ne.s32.totalorder %s629_s22, %s897_s23  ;;  %p903_p6 = scmp.lt.s32.totalorder %s897_s23, %s897_s23 }
  0x69   :  { %740 = vmatprep.subr.bf16.mxu0 %v933_v0  ;;  %v139_v8 = vadd.s32 %v138_v7, %v134_v5 }
  0x6a   :  { %p904_p7 = por %p903_p6, %p902_p5 }
  0x6b   :  { %v140_v9 = vadd.s32 536870912, %v139_v8 }
  0x6c   :  { %p905_p8 = pnand %p904_p7, %p898_p4 }
  0x6d   :  { %v141_v10 = vshrl.u32 %v140_v9, 30 }
  0x6f   :  { %v142_v12 = vshll.u32 %v141_v10, 30  ;;  %v165_v31 = vsub.s32 4, %v141_v10 }
  0x71   :  { %v143_v13 = vsub.s32 %v139_v8, %v142_v12  ;;  %v166_v34 = vsel %vm81_vm8, %v165_v31, %v141_v10 }
  0x72   :  { %v168_v37 = vsel %vm80_vm9, 0, %v166_v34 }
  0x73   :  { %v145_v14 = vsub.s32 0, %v143_v13  ;;  %v276_v38 = vadd.s32 3, %v168_v37  ;;  %v172_v40 = vand.u32 3, %v168_v37 }
  0x75   :  { %v640_v16 = vmin.u32 %v145_v14, %v143_v13  ;;  %v277_v39 = vand.u32 3, %v276_v38  ;;  %vm177_vm11 = vcmp.eq.s32.totalorder %v172_v40, 2  ;;  %vm174_vm13 = vcmp.eq.s32.totalorder %v172_v40, 0 }
  0x76   :  { %vm173_vm15 = vcmp.lt.s32.totalorder %v172_v40, 2 }
  0x77   :  { %v147_v17 = vclz %v640_v16  ;;  %vm282_vm10 = vcmp.eq.s32.totalorder %v277_v39, 2  ;;  %vm279_vm12 = vcmp.eq.s32.totalorder %v277_v39, 0  ;;  %vm278_vm14 = vcmp.lt.s32.totalorder %v277_v39, 2  ;;  %v664_v16 = vld [vmem:[%s1108_s5] ss:$0 sm:$0xff] }
  0x79   :  { %v641_v18 = vadd.s32 4294967294, %v147_v17 }
  0x7b   :  { %vm642_vm7 = vcmp.lt.s32.totalorder %v641_v18, 0 }
  0x7c   :  { %v150_v20 = vsel %vm642_vm7, 0, %v641_v18 }
  0x7d   :  { %v151_v21 = vsub.s32 32, %v150_v20  ;;  %v152_v22 = vshll.u32 %v143_v13, %v150_v20  ;;  %v155_v23 = vsub.s32 4294967266, %v150_v20 }
  0x7f   :  { %v153_v24 = vshrl.u32 %v135_v19, %v151_v21  ;;  %v156_v25 = vadd.s32 127, %v155_v23 }
  0x81   :  { %v154_v26 = vor.u32 %v153_v24, %v152_v22  ;;  %v157_v27 = vshll.u32 %v156_v25, 23 }
  0x83   :  { %v158_v28 = vor.u32 4788187, %v157_v27  ;;  %v161_v29 = vcvt.s32.f32 %v154_v26 }
  0x85   :  { %v159_v30 = vand.u32 2147483647, %v158_v28 }
  0x87   :  { %v162_v32 = vmul.f32 %v161_v29, %v159_v30 }
  0x89   :  { %v163_v33 = vxor.u32 2147483648, %v162_v32 }
  0x8b   :  { %v164_v35 = vsel %vm81_vm8, %v163_v33, %v162_v32 }
  0x8c   :  { %v167_v36 = vsel %vm80_vm9, %v1048_v11, %v164_v35  ;;  %v797_v11 = vld [vmem:[#allocation8 + $0x10] sm:$0xff]  }
  0x8d   :  { %803 = vcosq.f32 %v167_v36 }
  0x8e   :  { %805 = vsinq.f32 %v167_v36 }
  0x97   :  { %v804_v41 = vpop.eup %803 }
  0x98   :  { %v806_v42 = vpop.eup %805  ;;  %v178_v43 = vxor.u32 2147483648, %v804_v41 }
  0x99   :  { %v175_v44 = vxor.u32 2147483648, %v806_v42 }
  0x9a   :  { %v284_v15 = vsel %vm282_vm10, %v178_v43, %v806_v42  ;;  %v179_v45 = vsel %vm177_vm11, %v178_v43, %v806_v42 }
  0x9b   :  { %v281_v46 = vsel %vm279_vm12, %v804_v41, %v175_v44  ;;  %v176_v47 = vsel %vm174_vm13, %v804_v41, %v175_v44 }
  0x9c   :  { %v285_v48 = vsel %vm278_vm14, %v281_v46, %v284_v15  ;;  %v180_v49 = vsel %vm173_vm15, %v176_v47, %v179_v45 }
  0x9d   :  { %v286_v50 = vsel %vm171_vm1, nan, %v285_v48  ;;  %v181_v51 = vsel %vm171_vm1, nan, %v180_v49 }
  0x9e   :  { %v287_v53 = vpack.c.bf16 %v286_v50, %v286_v50  ;;  %v182_v54 = vpack.c.bf16 %v181_v51, %v181_v51 }
  0xa0   :  { %717 = vmatmul.mubr.bf16.vlgmr.msra.gmra.mrb[0].mxu0 %v287_v53  ;;  %737 = vmatmul.mubr.bf16.vlgmr.msra.gmra.mrb[0].mxu1 %v182_v54 }
  0xa1   :  { %741 = vmatpush3.bf16.msra.mxu0 %v795_v52  ;;  %756 = vmatprep.mubr.msk.bf16.mxu0 %vm934_vm0, %v933_v0 }
  0xa2   :  { %742 = vmatprep.subr.bf16.mxu0 %v933_v0 }
  0xa5   :  { %743 = vmatpush3.bf16.msra.mxu0 %v796_v55 }
  0xa6   :  { %744 = vmatprep.subr.bf16.mxu0 %v933_v0 }
  0xa9   :  { %745 = vmatpush3.bf16.msra.mxu0 %v797_v11 }
  0xaa   :  { %746 = vmatprep.subr.bf16.mxu0 %v933_v0 }
  0xad   :  { %747 = vmatpush3.bf16.msra.mxu0 %v798_v56 }
  0xae   :  { %748 = vmatprep.subr.bf16.mxu0 %v933_v0 }
  0xb1   :  { %749 = vmatpush3.bf16.msra.mxu0 %v799_v57 }
  0xb2   :  { %750 = vmatprep.subr.bf16.mxu0 %v933_v0 }
  0xb5   :  { %751 = vmatpush3.bf16.msra.mxu0 %v800_v58 }
  0xb6   :  { %752 = vmatprep.subr.bf16.mxu0 %v933_v0 }
  0xb9   :  { %753 = vmatpush3.bf16.msra.mxu0 %v801_v59 }
  0xba   :  { %754 = vmatprep.subr.bf16.mxu0 %v933_v0 }
  0xbd   :  { %755 = vmatpush3.bf16.msra.mxu0 %v802_v60 }
 0x173   :  { %v402_v61 = vpop.f32.mrb[0].mxu0  ;;  %v490_v62 = vpop.f32.mrb[0].mxu1 }
 0x174   :  { %v491_v1 = vadd.f32 %v490_v62, %v402_v61  ;;  %v718_v2 = vpop.f32.mrb[1].mxu0  ;;  %v738_v3 = vpop.f32.mrb[1].mxu1 }
 0x175   :  { %v405_v4 = vpop.f32.mrb[2].mxu0  ;;  %v493_v5 = vpop.f32.mrb[2].mxu1 }
 0x176   :  { %v503_v6 = vadd.f32 %v663_v63, %v491_v1  ;;  %v719_v7 = vpop.f32.mrb[3].mxu0  ;;  %v739_v8 = vpop.f32.mrb[3].mxu1 }
 0x178   :  { %v504_v9 = vmul.f32 0.5, %v503_v6 }
 0x17a   :  { %807 = vtanh.f32 %v504_v9 }
 0x184   :  { %v808_v10 = vpop.eup %807 }
 0x185   :  { %v506_v0 = vmul.f32 0.5, %v808_v10 }
 0x187   :  { %v507_v12 = vadd.f32 0.5, %v506_v0 }
 0x189   :  { %v508_v13 = vmul.f32 %v507_v12, %v503_v6 }
 0x18b   :  { %v509_v14 = vpack.c.bf16 %v508_v13, %v508_v13 }
 0x18d   :  { %757 = vmatmul.mubr.bf16.vlgmr.msra.gmra.mrb[4].mxu0 %v509_v14 }
 0x260   :  { %v615_v17 = vpop.f32.mrb[4].mxu0 }
 0x261   :  { %v616_v18 = vadd.f32 %v664_v16, %v615_v17  ;;  %v758_v19 = vpop.f32.mrb[5].mxu0 }
 0x262   :  { %v618_v20 = vpop.f32.mrb[6].mxu0 }
 0x263   :  { %621 = vst [vmem:[#allocation10] sm:$0xff] %v616_v18  ;;  %v759_v21 = vpop.f32.mrb[7].mxu0 }
 0x264   :  { %908 = shalt.err (!%p905_p8)
}
 0x265   :  { %s909_s5 = scalar_lea.hbm %s1109_s6, 128 }
 0x266   :  { %p910_p9 = scmp.ne.s32.totalorder %s1109_s6, %s909_s5  ;;  %p913_p10 = scmp.lt.u32.totalorder %s909_s5, %s1109_s6 }
 0x268   :  { %p915_p11 = pnand %p913_p10, %p910_p9 }
 0x26a   :  { %918 = shalt.err (!%p915_p11)
}
 0x26b   :  { %631 = dma.vmem_to_hbm [thread:$0]  %s629_s22, 128, %s1109_s6, [#allocation4]  }
 0x26c   :  { %925 = dma.done.wait [#allocation4], 128  }
 0x26d   :  { %926 = vsyncadd [#allocation4], 4294967168 }
 0x26e   :  { %635 = vsyncpa [#allocation3], 1 }
 0x26f   :  { %636 = vsyncpa [#allocation6], 1 }
 0x270   :  { %637 = vsyncpa [#allocation9], 1 }
 0x271   :  { %638 = vsyncpa [#allocation4], 1 }

</bundles_post_ra>
